<compile_context>
chip_gen: v7x
topology: tpu7x:2x2x1
jax: 0.10.0
libtpu: 0.0.40
codegen_flags: <defaults>
</compile_context>

<pallas_src>
import jax
import jax.numpy as jnp
from jax.experimental import pallas as pl
from jax.experimental.pallas import tpu as pltpu


def _round_up(x, m):
    return ((x + m - 1) // m) * m


def classification_kernel(x_ref, w1_ref, b1_ref, w2_ref, b2_ref, o_ref):
    """Fused backbone (Linear+ReLU) + head (Linear) for one batch tile."""
    # In-kernel f32 -> bf16 cast of the activations (hidden under the input DMA).
    x = x_ref[...].astype(jnp.bfloat16)                               # [TB, F] bf16
    # backbone: Linear(F -> H) + ReLU   (bf16 MXU matmul, f32 accumulation)
    h = jnp.dot(x, w1_ref[...], preferred_element_type=jnp.float32)  # [TB, Hp] f32
    h = jnp.maximum(h + b1_ref[...], 0.0)                            # bias + ReLU (VPU, f32)
    # head: Linear(H -> C) -- cast activations back to bf16 for a single MXU pass
    out = jnp.dot(h.astype(jnp.bfloat16), w2_ref[...],
                  preferred_element_type=jnp.float32)                # [TB, Cp] f32
    # Lane-dense (Cp = multiple of 128), unmasked bf16 store.
    o_ref[...] = (out + b2_ref[...]).astype(o_ref.dtype)


def classification_model(x, w1, b1, w2, b2, *, max_tile_b=1024):
    """Wrapper: tiles over the batch dimension only.

    x stays unpadded along F (full-extent block) and is cast to bf16 inside
    the kernel.  Only H and C are rounded to 128 for clean MXU tiles and a
    lane-dense output store.  The batch tile is chosen so the grid has just a
    couple of steps, but at least 2 so v7x can shard across its TensorCores.
    """
    B, F = x.shape
    H = w1.shape[1]
    C = w2.shape[1]

    Hp = _round_up(H, 128)
    Cp = _round_up(C, 128)

    # Big tiles, few grid steps; keep >= 2 steps for v7x megacore sharding.
    tile_b = min(max_tile_b, _round_up(pl.cdiv(B, 2), 8))
    tile_b = max(tile_b, 8)
    Bp = _round_up(B, tile_b)

    # Batch padding (if any) via jnp.pad so XLA fuses it; no F padding at all.
    x_in = x if Bp == B else jnp.pad(x, ((0, Bp - B), (0, 0)))

    # Small, grid-invariant parameters: pad H/C to 128 multiples (zero padding
    # keeps the math identical); bf16 weights for the MXU, f32 biases.
    w1p = jnp.pad(w1.astype(jnp.bfloat16), ((0, 0), (0, Hp - H)))
    b1p = jnp.pad(jnp.asarray(b1, jnp.float32).reshape(1, -1), ((0, 0), (0, Hp - H)))
    w2p = jnp.pad(w2.astype(jnp.bfloat16), ((0, Hp - H), (0, Cp - C)))
    b2p = jnp.pad(jnp.asarray(b2, jnp.float32).reshape(1, -1), ((0, 0), (0, Cp - C)))

    grid = (Bp // tile_b,)

    cost = pl.CostEstimate(
        flops=2 * Bp * (F * Hp + Hp * Cp),
        transcendentals=0,
        bytes_accessed=(Bp * F * 4                 # f32 x read
                        + F * Hp * 2 + Hp * Cp * 2  # bf16 weights
                        + Hp * 4 + Cp * 4           # f32 biases
                        + Bp * Cp * 2),             # bf16 output
    )

    out_padded = pl.pallas_call(
        classification_kernel,
        out_shape=jax.ShapeDtypeStruct((Bp, Cp), jnp.bfloat16),
        grid_spec=pltpu.PrefetchScalarGridSpec(
            num_scalar_prefetch=0,
            grid=grid,
            in_specs=[
                pl.BlockSpec((tile_b, F), lambda i: (i, 0)),   # x tile (full F extent)
                pl.BlockSpec((F, Hp), lambda i: (0, 0)),       # backbone weight
                pl.BlockSpec((1, Hp), lambda i: (0, 0)),       # backbone bias
                pl.BlockSpec((Hp, Cp), lambda i: (0, 0)),      # head weight
                pl.BlockSpec((1, Cp), lambda i: (0, 0)),       # head bias
            ],
            out_specs=pl.BlockSpec((tile_b, Cp), lambda i: (i, 0)),
        ),
        compiler_params=pltpu.CompilerParams(
            dimension_semantics=("parallel",),
        ),
        cost_estimate=cost,
    )(x_in, w1p, b1p, w2p, b2p)

    # Slice away batch / class padding and upcast to f32 logits in one fused,
    # narrow copy (reads only the [B, C] window, not the whole padded slab twice).
    return out_padded[:B, :C].astype(jnp.float32)


def reference_model(x, w1, b1, w2, b2):
    """Plain-JAX f32 reference for correctness checking."""
    h = jnp.maximum(x @ w1 + b1, 0.0)
    return h @ w2 + b2


if __name__ == "__main__":
    # Small, deterministic example shapes (grid of 2 steps at tile_b=512).
    B, F, H, C = 1024, 64, 128, 16
    key = jax.random.PRNGKey(0)
    k_x, k_w1, k_b1, k_w2, k_b2 = jax.random.split(key, 5)

    x = jax.random.normal(k_x, (B, F), dtype=jnp.float32)
    # Deterministic parameter init (Kaiming-ish scaling), [in, out] layout.
    w1 = jax.random.normal(k_w1, (F, H), dtype=jnp.float32) * (1.0 / jnp.sqrt(F))
    b1 = jax.random.normal(k_b1, (1, H), dtype=jnp.float32) * 0.01
    w2 = jax.random.normal(k_w2, (H, C), dtype=jnp.float32) * (1.0 / jnp.sqrt(H))
    b2 = jax.random.normal(k_b2, (1, C), dtype=jnp.float32) * 0.01

    out = classification_model(x, w1, b1, w2, b2)
    out = jax.block_until_ready(out)

    ref = reference_model(x, w1, b1, w2, b2)
    assert out.shape == (B, C)
    # bf16 operands + bf16 output with f32 accumulation -> compare loosely to
    # the f32 reference (classification logits tolerate ~1e-2 relative error).
    assert jnp.allclose(out, ref, atol=1e-1, rtol=1e-1), "mismatch vs reference"

    print("KERNEL_OK")
</pallas_src>

<mosaic_0001>
module attributes {stable_mosaic.version = 11 : i64} {
  func.func @classification_kernel(%arg0: i32, %arg1: memref<512x64xf32, #tpu.memory_space<vmem>>, %arg2: memref<64x128xbf16, #tpu.memory_space<vmem>>, %arg3: memref<1x128xf32, #tpu.memory_space<vmem>>, %arg4: memref<128x128xbf16, #tpu.memory_space<vmem>>, %arg5: memref<1x128xf32, #tpu.memory_space<vmem>>, %arg6: memref<512x128xbf16, #tpu.memory_space<vmem>>) attributes {dimension_semantics = [#tpu.dimension_semantics<parallel>], iteration_bounds = array<i64: 2>, scalar_prefetch = 0 : i64, scratch_operands = 0 : i64, tpu.core_type = #tpu.core_type<tc>, window_params = [{transform_indices = @transform_0, window_bounds = array<i64: 512, 64>}, {pipeline_mode = #tpu.pipeline_mode<synchronous>, transform_indices = @transform_1, window_bounds = array<i64: 64, 128>}, {pipeline_mode = #tpu.pipeline_mode<synchronous>, transform_indices = @transform_2, window_bounds = array<i64: 1, 128>}, {pipeline_mode = #tpu.pipeline_mode<synchronous>, transform_indices = @transform_3, window_bounds = array<i64: 128, 128>}, {pipeline_mode = #tpu.pipeline_mode<synchronous>, transform_indices = @transform_4, window_bounds = array<i64: 1, 128>}, {transform_indices = @transform_5, window_bounds = array<i64: 512, 128>}]} {
    %c0 = arith.constant 0 : index
    %c0_0 = arith.constant 0 : index
    %0 = vector.load %arg1[%c0, %c0_0] : memref<512x64xf32, #tpu.memory_space<vmem>>, vector<512x64xf32>
    %1 = arith.truncf %0 : vector<512x64xf32> to vector<512x64xbf16>
    %c0_1 = arith.constant 0 : index
    %c0_2 = arith.constant 0 : index
    %2 = vector.load %arg2[%c0_1, %c0_2] : memref<64x128xbf16, #tpu.memory_space<vmem>>, vector<64x128xbf16>
    %cst = arith.constant dense<0.000000e+00> : vector<512x128xf32>
    %3 = tpu.matmul %1, %2, %cst {dimension_numbers = #tpu.dot_dimension_numbers<[1], [0], [0], [1], [0, 0, 1, 1], [], []>} : vector<512x64xbf16>, vector<64x128xbf16>, vector<512x128xf32> -> vector<512x128xf32>
    %c0_3 = arith.constant 0 : index
    %c0_4 = arith.constant 0 : index
    %4 = vector.load %arg3[%c0_3, %c0_4] : memref<1x128xf32, #tpu.memory_space<vmem>>, vector<1x128xf32>
    %5 = vector.broadcast %4 : vector<1x128xf32> to vector<512x128xf32>
    %6 = arith.addf %3, %5 : vector<512x128xf32>
    %cst_5 = arith.constant 0.000000e+00 : f32
    %7 = vector.broadcast %cst_5 : f32 to vector<512x128xf32>
    %8 = arith.maximumf %6, %7 : vector<512x128xf32>
    %9 = arith.truncf %8 : vector<512x128xf32> to vector<512x128xbf16>
    %c0_6 = arith.constant 0 : index
    %c0_7 = arith.constant 0 : index
    %10 = vector.load %arg4[%c0_6, %c0_7] : memref<128x128xbf16, #tpu.memory_space<vmem>>, vector<128x128xbf16>
    %cst_8 = arith.constant dense<0.000000e+00> : vector<512x128xf32>
    %11 = tpu.matmul %9, %10, %cst_8 {dimension_numbers = #tpu.dot_dimension_numbers<[1], [0], [0], [1], [0, 0, 1, 1], [], []>} : vector<512x128xbf16>, vector<128x128xbf16>, vector<512x128xf32> -> vector<512x128xf32>
    %c0_9 = arith.constant 0 : index
    %c0_10 = arith.constant 0 : index
    %12 = vector.load %arg5[%c0_9, %c0_10] : memref<1x128xf32, #tpu.memory_space<vmem>>, vector<1x128xf32>
    %13 = vector.broadcast %12 : vector<1x128xf32> to vector<512x128xf32>
    %14 = arith.addf %11, %13 : vector<512x128xf32>
    %15 = arith.truncf %14 : vector<512x128xf32> to vector<512x128xbf16>
    %c0_11 = arith.constant 0 : index
    %c0_12 = arith.constant 0 : index
    %16 = vector.load %arg6[%c0_11, %c0_12] : memref<512x128xbf16, #tpu.memory_space<vmem>>, vector<512x128xbf16>
    tpu.vector_store %arg6[%c0_11, %c0_12], %15 {strides = array<i32>} : memref<512x128xbf16, #tpu.memory_space<vmem>>, vector<512x128xbf16>,
    return
  }
  func.func @transform_0(%arg0: i32) -> (i32, i32) {
    %c0_i32 = arith.constant 0 : i32
    %c0_i32_0 = arith.constant 0 : i32
    return %arg0, %c0_i32 : i32, i32
  }
  func.func @transform_1(%arg0: i32) -> (i32, i32) {
    %c0_i32 = arith.constant 0 : i32
    %c0_i32_0 = arith.constant 0 : i32
    %c0_i32_1 = arith.constant 0 : i32
    return %c0_i32, %c0_i32_0 : i32, i32
  }
  func.func @transform_2(%arg0: i32) -> (i32, i32) {
    %c0_i32 = arith.constant 0 : i32
    %c0_i32_0 = arith.constant 0 : i32
    %c0_i32_1 = arith.constant 0 : i32
    return %c0_i32, %c0_i32_0 : i32, i32
  }
  func.func @transform_3(%arg0: i32) -> (i32, i32) {
    %c0_i32 = arith.constant 0 : i32
    %c0_i32_0 = arith.constant 0 : i32
    %c0_i32_1 = arith.constant 0 : i32
    return %c0_i32, %c0_i32_0 : i32, i32
  }
  func.func @transform_4(%arg0: i32) -> (i32, i32) {
    %c0_i32 = arith.constant 0 : i32
    %c0_i32_0 = arith.constant 0 : i32
    %c0_i32_1 = arith.constant 0 : i32
    return %c0_i32, %c0_i32_0 : i32, i32
  }
  func.func @transform_5(%arg0: i32) -> (i32, i32) {
    %c0_i32 = arith.constant 0 : i32
    %c0_i32_0 = arith.constant 0 : i32
    return %arg0, %c0_i32 : i32, i32
  }
}

</mosaic_0001>

<bundles_post_ra>
// kernel: tpu_custom_call.1
= control target key start
LH: loop header
LB: loop body
LE: loop exit
PB: predicated region body
PF: predicated region fallthrough
CT: control target
= control target key end

     0   :  { %10 = vsyncpa [#allocation3], 0  ;;  %s2785_s0 = inlined_call_operand.vmem [shape: f32[1024,64], index: 0, kind: input, shape index: {}]   ;;  %s2786_s1 = inlined_call_operand.vmem [shape: bf16[64,128], index: 1, kind: input, shape index: {}]   ;;  %s2787_s2 = inlined_call_operand.vmem [shape: f32[1,128], index: 2, kind: input, shape index: {}]   ;;  %s2788_s3 = inlined_call_operand.vmem [shape: bf16[128,128], index: 3, kind: input, shape index: {}]   ;;  %s2789_s4 = inlined_call_operand.vmem [shape: f32[1,128], index: 4, kind: input, shape index: {}]   ;;  %s2790_s5 = inlined_call_operand.hbm [shape: bf16[1024,128], index: 5, kind: output, shape index: {}]  }
   0x1   :  { %12 = vsyncpa [#allocation3 + $0x1], 0  ;;  %s2372_s18 = smov 0   ;;  %s2374_s19 = smov 0  }
   0x2   :  { %s2376_s20 = smov 0   ;;  %s2378_s21 = smov 0  }
   0x3 LB: > { %s2393_s22 = sadd.s32 4294967295, %s2337_s21   ;;  %s1600_s23 = sadd.s32 4294967294, %s2337_s21   ;;  %s2337_s21 = sphi %s2378_s21, %s2796_s21   ;;  %s2333_s20 = sphi %s2376_s20, %s2795_s20   ;;  %s2329_s19 = sphi %s2374_s19, %s2794_s19   ;;  %s2325_s18 = sphi %s2372_s18, %s2793_s18  }
   0x4   : > { %s2397_s24 = sadd.s32 1, %s2337_s21   ;;  %s135_s25 = sadd.s32 1, %s2333_s20 }
   0x5   : > { %s132_s26 = ssub.s32 %s2337_s21, %s2397_s24  ;;  %p145_p0 = scmp.ne.s32.totalorder %s2333_s20, %s2329_s19 }
   0x6   : > { %p133_p1 = scmp.eq.s32.totalorder %s132_s26, 0  ;;  %p146_p2 = scmp.eq.s32.totalorder %s2393_s22, 1 }
   0x7   : > { %p151_p3 = scmp.ne.s32.totalorder %s2329_s19, %s2325_s18  ;;  %p152_p4 = scmp.eq.s32.totalorder %s1600_s23, 1 }
   0x8   : > { %s2408_s27 = scalar_select %p133_p1, %s2333_s20, %s135_s25  }
   0x9   : > { %p2410_p5 = por %p146_p2, %p145_p0  ;;  %p2414_p6 = por %p152_p4, %p151_p3 }
   0xa   : > { %p1603_p7 = scmp.ge.s32.totalorder %s2337_s21, 1  ;;  %p191_p8 = scmp.lt.s32.totalorder %s2337_s21, 3 }
   0xc   : > { %p192_p9 = pnand %p1603_p7, %p191_p8 }
   0xd   : > { %v2263_v0 = vld [vmem:[%s2786_s1] sm:$0xff] (!%p192_p9)   ;;  %s1605_s7 = sshll.u32 (!%p192_p9), %s2393_s22, 6  ;;  %v2264_v1 = vld [vmem:[%s2786_s1 + $0x8] sm:$0xff] (!%p192_p9)   ;;  %v2265_v2 = vld [vmem:[%s2786_s1 + $0x10] sm:$0xff] (!%p192_p9)   ;;  %vm362_vm0 = vcmask (!%p192_p9), 523264   ;;  %s1786_s9 = sshll.u32 (!%p192_p9), %s2393_s22, 12 }
   0xe   : > { %195 = sbr.rel (%p192_p9) target bundleno = 606 (0x25e), region = 40  ;;  %p220_p10 = scmp.lt.s32.totalorder (!%p192_p9), %s1605_s7, 127  ;;  %2054 = vmatprep.subr.bf16.mxu0 (!%p192_p9), %v2263_v0  ;;  %v2266_v5 = vld [vmem:[%s2786_s1 + $0x18] sm:$0xff] (!%p192_p9)   ;;  %v2267_v23 = vld [vmem:[%s2788_s3] sm:$0xff] (!%p192_p9)   ;;  %v2268_v24 = vld [vmem:[%s2788_s3 + $0x8] sm:$0xff] (!%p192_p9)  }
   0xf   : > { %2055 = vmatpush3.bf16.msra.mxu0 (!%p192_p9), %v2263_v0  ;;  %2206 = vmatprep.subr.bf16.mxu1 (!%p192_p9), %v2267_v23  ;;  %v2269_v27 = vld [vmem:[%s2788_s3 + $0x10] sm:$0xff] (!%p192_p9)   ;;  %v2270_v32 = vld [vmem:[%s2788_s3 + $0x18] sm:$0xff] (!%p192_p9)   ;;  %v2271_v35 = vld [vmem:[%s2788_s3 + $0x20] sm:$0xff] (!%p192_p9)   ;;  %s2736_s13 = scalar_lea.hbm (!%p192_p9), %s2790_s5, %s1786_s9  ;;  %s2339_s16 = smov (!%p192_p9), [#allocation2]  }
  0x10   : > { %2056 = vmatprep.subr.bf16.mxu0 (!%p192_p9), %v2264_v1  ;;  %2214 = vmatpush3.bf16.msra.mxu1 (!%p192_p9), %v2267_v23  ;;  %v2272_v40 = vld [vmem:[%s2788_s3 + $0x28] sm:$0xff] (!%p192_p9)   ;;  %s2279_s17 = sshll.u32 (!%p192_p9), %s2339_s16, 4  ;;  %s2280_s17 = int_to_ptr.vmem [resolvable:$false] %s2279_s17 }
  0x11   : > { %2207 = vmatprep.subr.bf16.mxu1 (!%p192_p9), %v2268_v24  ;;  %s2281_s23 = scalar_lea.vmem (!%p192_p9), %s2280_s17, 8192 }
  0x13   : > { %2057 = vmatpush3.bf16.msra.mxu0 (!%p192_p9), %v2264_v1 }
  0x14   : > { %2058 = vmatprep.subr.bf16.mxu0 (!%p192_p9), %v2265_v2  ;;  %2215 = vmatpush3.bf16.msra.mxu1 (!%p192_p9), %v2268_v24 }
  0x15   : > { %s2798_s7 = smov (!%p220_p10, %s1605_s7), 127  ;;  %2208 = vmatprep.subr.bf16.mxu1 %v2269_v27 }
  0x16   : > { %s1606_s12 = sshll.u32 %s2798_s7, 3 }
  0x17   : > { %s2433_s15 = scalar_lea.vmem %s2785_s0, %s1606_s12  ;;  %2059 = vmatpush3.bf16.msra.mxu0 %v2265_v2 }
  0x18   : > { %v227_v3 = vld [vmem:[%s2433_s15] sm:$0xff]  ;;  %v228_v4 = vld [vmem:[%s2433_s15 + $0x8] sm:$0xff]  ;;  %v229_v7 = vld [vmem:[%s2433_s15 + $0x10] sm:$0xff]  ;;  %2060 = vmatprep.subr.bf16.mxu0 %v2266_v5  ;;  %2216 = vmatpush3.bf16.msra.mxu1 %v2269_v27 }
  0x19   : > { %v291_v6 = vpack.c.bf16 %v228_v4, %v227_v3  ;;  %v230_v8 = vld [vmem:[%s2433_s15 + $0x18] sm:$0xff]  ;;  %v231_v9 = vld [vmem:[%s2433_s15 + $0x20] sm:$0xff]  ;;  %v232_v10 = vld [vmem:[%s2433_s15 + $0x28] sm:$0xff]  ;;  %2209 = vmatprep.subr.bf16.mxu1 %v2270_v32 }
  0x1a   : > { %v292_v11 = vpack.c.bf16 %v230_v8, %v229_v7  ;;  %v293_v12 = vpack.c.bf16 %v232_v10, %v231_v9  ;;  %v233_v13 = vld [vmem:[%s2433_s15 + $0x30] sm:$0xff]  ;;  %v234_v14 = vld [vmem:[%s2433_s15 + $0x38] sm:$0xff]  ;;  %v235_v15 = vld [vmem:[%s2433_s15 + $0x40] sm:$0xff] }
  0x1b   : > { %2062 = vmatprep.mubr.msk.bf16.mxu0 %vm362_vm0, %v291_v6  ;;  %2061 = vmatpush3.bf16.msra.mxu0 %v2266_v5  ;;  %v236_v16 = vld [vmem:[%s2433_s15 + $0x48] sm:$0xff]  ;;  %v294_v17 = vpack.c.bf16 %v234_v14, %v233_v13  ;;  %v237_v19 = vld [vmem:[%s2433_s15 + $0x50] sm:$0xff]  ;;  %v238_v20 = vld [vmem:[%s2433_s15 + $0x58] sm:$0xff] }
  0x1c   : > { %v295_v18 = vpack.c.bf16 %v236_v16, %v235_v15  ;;  %v239_v21 = vld [vmem:[%s2433_s15 + $0x60] sm:$0xff]  ;;  %v240_v22 = vld [vmem:[%s2433_s15 + $0x68] sm:$0xff]  ;;  %v296_v25 = vpack.c.bf16 %v238_v20, %v237_v19  ;;  %2126 = vmatprep.subr.bf16.mxu0 %v2267_v23  ;;  %v241_v28 = vld [vmem:[%s2433_s15 + $0x70] sm:$0xff]  ;;  %2217 = vmatpush3.bf16.msra.mxu1 %v2270_v32 }
  0x1d   : > { %v297_v26 = vpack.c.bf16 %v240_v22, %v239_v21  ;;  %v242_v29 = vld [vmem:[%s2433_s15 + $0x78] sm:$0xff]  ;;  %v243_v30 = vld [vmem:[%s2433_s15 + $0x80] sm:$0xff]  ;;  %v244_v31 = vld [vmem:[%s2433_s15 + $0x88] sm:$0xff]  ;;  %2210 = vmatprep.subr.bf16.mxu1 %v2271_v35 }
  0x1e   : > { %2063 = vmatmul.mubr.msk.bf16.vlgmr.msra.gmra.mrb[0].mxu0 %vm362_vm0, %v292_v11  ;;  %v298_v33 = vpack.c.bf16 %v242_v29, %v241_v28  ;;  %v299_v34 = vpack.c.bf16 %v244_v31, %v243_v30  ;;  %v245_v36 = vld [vmem:[%s2433_s15 + $0x90] sm:$0xff]  ;;  %v246_v37 = vld [vmem:[%s2433_s15 + $0x98] sm:$0xff]  ;;  %v247_v38 = vld [vmem:[%s2433_s15 + $0xa0] sm:$0xff] }
  0x1f   : > { %2066 = vmatprep.mubr.msk.bf16.mxu0 %vm362_vm0, %v293_v12  ;;  %2127 = vmatpush3.bf16.msra.mxu0 %v2267_v23  ;;  %v248_v39 = vld [vmem:[%s2433_s15 + $0xa8] sm:$0xff]  ;;  %v300_v41 = vpack.c.bf16 %v246_v37, %v245_v36  ;;  %v249_v43 = vld [vmem:[%s2433_s15 + $0xb0] sm:$0xff]  ;;  %v250_v44 = vld [vmem:[%s2433_s15 + $0xb8] sm:$0xff] }
  0x20   : > { %2128 = vmatprep.subr.bf16.mxu0 %v2268_v24  ;;  %v301_v42 = vpack.c.bf16 %v248_v39, %v247_v38  ;;  %2218 = vmatpush3.bf16.msra.mxu1 %v2271_v35  ;;  %v251_v45 = vld [vmem:[%s2433_s15 + $0xc0] sm:$0xff]  ;;  %v252_v46 = vld [vmem:[%s2433_s15 + $0xc8] sm:$0xff]  ;;  %v302_v47 = vpack.c.bf16 %v250_v44, %v249_v43  ;;  %v253_v49 = vld [vmem:[%s2433_s15 + $0xd0] sm:$0xff] }
  0x21   : > { %2211 = vmatprep.subr.bf16.mxu1 %v2272_v40  ;;  %v303_v48 = vpack.c.bf16 %v252_v46, %v251_v45  ;;  %v254_v50 = vld [vmem:[%s2433_s15 + $0xd8] sm:$0xff]  ;;  %v255_v51 = vld [vmem:[%s2433_s15 + $0xe0] sm:$0xff]  ;;  %v256_v52 = vld [vmem:[%s2433_s15 + $0xe8] sm:$0xff] }
  0x22   : > { %v304_v53 = vpack.c.bf16 %v254_v50, %v253_v49  ;;  %v305_v54 = vpack.c.bf16 %v256_v52, %v255_v51  ;;  %v257_v55 = vld [vmem:[%s2433_s15 + $0xf0] sm:$0xff]  ;;  %v258_v56 = vld [vmem:[%s2433_s15 + $0xf8] sm:$0xff]  ;;  %v259_v57 = vld [vmem:[%s2433_s15 + $0x100] sm:$0xff] }
  0x23   : > { %2129 = vmatpush3.bf16.msra.mxu0 %v2268_v24  ;;  %v260_v58 = vld [vmem:[%s2433_s15 + $0x108] sm:$0xff]  ;;  %v306_v59 = vpack.c.bf16 %v258_v56, %v257_v55  ;;  %v261_v61 = vld [vmem:[%s2433_s15 + $0x110] sm:$0xff]  ;;  %v262_v62 = vld [vmem:[%s2433_s15 + $0x118] sm:$0xff] }
  0x24   : > { %2130 = vmatprep.subr.bf16.mxu0 %v2269_v27  ;;  %2219 = vmatpush3.bf16.msra.mxu1 %v2272_v40  ;;  %v307_v60 = vpack.c.bf16 %v260_v58, %v259_v57  ;;  %v263_v63 = vld [vmem:[%s2433_s15 + $0x120] sm:$0xff]  ;;  %v264_v0 = vld [vmem:[%s2433_s15 + $0x128] sm:$0xff]  ;;  %v308_v1 = vpack.c.bf16 %v262_v62, %v261_v61  ;;  %v265_v3 = vld [vmem:[%s2433_s15 + $0x130] sm:$0xff] }
  0x25   : > { %v309_v2 = vpack.c.bf16 %v264_v0, %v263_v63  ;;  %v266_v4 = vld [vmem:[%s2433_s15 + $0x138] sm:$0xff]  ;;  %v267_v5 = vld [vmem:[%s2433_s15 + $0x140] sm:$0xff]  ;;  %v268_v6 = vld [vmem:[%s2433_s15 + $0x148] sm:$0xff] }
  0x26   : > { %2067 = vmatmul.mubr.msk.bf16.gmra.mrb[4].mxu0 %vm362_vm0, %v294_v17  ;;  %v310_v7 = vpack.c.bf16 %v266_v4, %v265_v3  ;;  %v311_v8 = vpack.c.bf16 %v268_v6, %v267_v5  ;;  %v269_v9 = vld [vmem:[%s2433_s15 + $0x150] sm:$0xff]  ;;  %v270_v10 = vld [vmem:[%s2433_s15 + $0x158] sm:$0xff]  ;;  %v271_v11 = vld [vmem:[%s2433_s15 + $0x160] sm:$0xff] }
  0x27   : > { %2070 = vmatprep.mubr.msk.bf16.mxu0 %vm362_vm0, %v295_v18  ;;  %2131 = vmatpush3.bf16.msra.mxu0 %v2269_v27  ;;  %v272_v12 = vld [vmem:[%s2433_s15 + $0x168] sm:$0xff]  ;;  %v312_v13 = vpack.c.bf16 %v270_v10, %v269_v9  ;;  %v273_v15 = vld [vmem:[%s2433_s15 + $0x170] sm:$0xff]  ;;  %v274_v16 = vld [vmem:[%s2433_s15 + $0x178] sm:$0xff] }
  0x28   : > { %2132 = vmatprep.subr.bf16.mxu0 %v2270_v32  ;;  %v313_v14 = vpack.c.bf16 %v272_v12, %v271_v11  ;;  %v275_v17 = vld [vmem:[%s2433_s15 + $0x180] sm:$0xff]  ;;  %v276_v18 = vld [vmem:[%s2433_s15 + $0x188] sm:$0xff]  ;;  %v314_v19 = vpack.c.bf16 %v274_v16, %v273_v15  ;;  %v2273_v20 = vld [vmem:[%s2788_s3 + $0x30] sm:$0xff]  }
  0x29   : > { %v315_v21 = vpack.c.bf16 %v276_v18, %v275_v17  ;;  %2212 = vmatprep.subr.bf16.mxu1 %v2273_v20  ;;  %v2274_v22 = vld [vmem:[%s2788_s3 + $0x38] sm:$0xff]   ;;  %v277_v23 = vld [vmem:[%s2433_s15 + $0x190] sm:$0xff]  ;;  %v283_v31 = vld [vmem:[%s2433_s15 + $0x1c0] sm:$0xff] }
  0x2a   : > { %2220 = vmatpush3.bf16.msra.mxu1 %v2273_v20  ;;  %v278_v24 = vld [vmem:[%s2433_s15 + $0x198] sm:$0xff]  ;;  %v281_v29 = vld [vmem:[%s2433_s15 + $0x1b0] sm:$0xff]  ;;  %v287_v37 = vld [vmem:[%s2433_s15 + $0x1e0] sm:$0xff] }
  0x2b   : > { %2133 = vmatpush3.bf16.msra.mxu0 %v2270_v32  ;;  %2213 = vmatprep.subr.bf16.mxu1 %v2274_v22  ;;  %v316_v27 = vpack.c.bf16 %v278_v24, %v277_v23  ;;  %v282_v30 = vld [vmem:[%s2433_s15 + $0x1b8] sm:$0xff]  ;;  %v284_v32 = vld [vmem:[%s2433_s15 + $0x1c8] sm:$0xff]  ;;  %v2561_v44 = vld [vmem:[%s2787_s2] ss:$0 sm:$0xff] }
  0x2c   : > { %2134 = vmatprep.subr.bf16.mxu0 %v2271_v35  ;;  %v286_v36 = vld [vmem:[%s2433_s15 + $0x1d8] sm:$0xff]  ;;  %v288_v38 = vld [vmem:[%s2433_s15 + $0x1e8] sm:$0xff] }
  0x2e   : > { %2071 = vmatmul.mubr.msk.bf16.gmra.mrb[8].mxu0 %vm362_vm0, %v296_v25  ;;  %v279_v25 = vld [vmem:[%s2433_s15 + $0x1a0] sm:$0xff]  ;;  %2221 = vmatpush3.bf16.msra.mxu1 %v2274_v22 }
  0x2f   : > { %2074 = vmatprep.mubr.msk.bf16.mxu0 %vm362_vm0, %v297_v26  ;;  %2135 = vmatpush3.bf16.msra.mxu0 %v2271_v35  ;;  %v280_v26 = vld [vmem:[%s2433_s15 + $0x1a8] sm:$0xff]  ;;  %v285_v35 = vld [vmem:[%s2433_s15 + $0x1d0] sm:$0xff] }
  0x30   : > { %2136 = vmatprep.subr.bf16.mxu0 %v2272_v40  ;;  %v317_v28 = vpack.c.bf16 %v280_v26, %v279_v25  ;;  %v320_v39 = vpack.c.bf16 %v286_v36, %v285_v35 }
  0x33   : > { %2137 = vmatpush3.bf16.msra.mxu0 %v2272_v40  ;;  %v321_v40 = vpack.c.bf16 %v288_v38, %v287_v37 }
  0x34   : > { %2138 = vmatprep.subr.bf16.mxu0 %v2273_v20 }
  0x36   : > { %2075 = vmatmul.mubr.msk.bf16.gmra.mrb[12].mxu0 %vm362_vm0, %v298_v33  ;;  %v318_v33 = vpack.c.bf16 %v282_v30, %v281_v29 }
  0x37   : > { %2078 = vmatprep.mubr.msk.bf16.mxu0 %vm362_vm0, %v299_v34  ;;  %2139 = vmatpush3.bf16.msra.mxu0 %v2273_v20  ;;  %v319_v34 = vpack.c.bf16 %v284_v32, %v283_v31 }
  0x38   : > { %2140 = vmatprep.subr.bf16.mxu0 %v2274_v22 }
  0x3b   : > { %2141 = vmatpush3.bf16.msra.mxu0 %v2274_v22 }
  0x3e   : > { %2079 = vmatmul.mubr.msk.bf16.gmra.mrb[16].mxu0 %vm362_vm0, %v300_v41  ;;  %v289_v41 = vld [vmem:[%s2433_s15 + $0x1f0] sm:$0xff] }
  0x3f   : > { %2082 = vmatprep.mubr.msk.bf16.mxu0 %vm362_vm0, %v301_v42  ;;  %v290_v42 = vld [vmem:[%s2433_s15 + $0x1f8] sm:$0xff]  ;;  %s216_s15 = sand.u32 1, %s2329_s19  }
  0x40   : > { %v322_v43 = vpack.c.bf16 %v290_v42, %v289_v41  ;;  %s1604_s7 = sshll.u32 %s216_s15, 8  ;;  %s2744_s22 = scalar_lea.sflag [#allocation3], %s216_s15 }
  0x41   : > { %s2639_s8 = scalar_lea.vmem [#allocation2], %s1604_s7 }
  0x42   : > { %s1538_s10 = sshll.u32 %s2639_s8, 4  ;;  %s2738_s10 = int_to_ptr.vmem [resolvable:$true] %s1538_s10 }
  0x43   : > { %s2275_s14 = scalar_lea.vmem %s2738_s10, 4096  ;;  %p2282_p0 = scmp.lt.s32.totalorder %s2738_s10, %s2280_s17 }
  0x44   : > { %p2276_p11 = scmp.ne.s32.totalorder %s2738_s10, %s2275_s14  ;;  %p2283_p1 = scmp.lt.s32.totalorder %s2281_s23, %s2275_s14 }
  0x46   : > { %2083 = vmatmul.mubr.msk.bf16.gmra.mrb[20].mxu0 %vm362_vm0, %v302_v47  ;;  %p2277_p12 = pnand %p2276_p11, %p2410_p5  ;;  %p2284_p2 = por %p2283_p1, %p2282_p0 }
  0x47   : > { %2086 = vmatprep.mubr.msk.bf16.mxu0 %vm362_vm0, %v303_v48 }
  0x48   : > { %p2278_p13 = pneg %p2277_p12 }
  0x4a   : > { %p2285_p3 = pnand %p2284_p2, %p2278_p13 }
  0x4e   : > { %2087 = vmatmul.mubr.msk.bf16.gmra.mrb[24].mxu0 %vm362_vm0, %v304_v53 }
  0x4f   : > { %2090 = vmatprep.mubr.msk.bf16.mxu0 %vm362_vm0, %v305_v54 }
  0x56   : > { %2091 = vmatmul.mubr.msk.bf16.gmra.mrb[28].mxu0 %vm362_vm0, %v306_v59 }
  0x57   : > { %2094 = vmatprep.mubr.msk.bf16.mxu0 %vm362_vm0, %v307_v60 }
  0x5e   : > { %2095 = vmatmul.mubr.msk.bf16.gmra.mrb[32].mxu0 %vm362_vm0, %v308_v1 }
  0x5f   : > { %2098 = vmatprep.mubr.msk.bf16.mxu0 %vm362_vm0, %v309_v2 }
  0x66   : > { %2099 = vmatmul.mubr.msk.bf16.gmra.mrb[36].mxu0 %vm362_vm0, %v310_v7 }
  0x67   : > { %2102 = vmatprep.mubr.msk.bf16.mxu0 %vm362_vm0, %v311_v8 }
  0x6e   : > { %2103 = vmatmul.mubr.msk.bf16.gmra.mrb[40].mxu0 %vm362_vm0, %v312_v13 }
  0x6f   : > { %2106 = vmatprep.mubr.msk.bf16.mxu0 %vm362_vm0, %v313_v14 }
  0x76   : > { %2107 = vmatmul.mubr.msk.bf16.gmra.mrb[44].mxu0 %vm362_vm0, %v314_v19 }
  0x77   : > { %2110 = vmatprep.mubr.msk.bf16.mxu0 %vm362_vm0, %v315_v21 }
  0x7e   : > { %2111 = vmatmul.mubr.msk.bf16.gmra.mrb[48].mxu0 %vm362_vm0, %v316_v27 }
  0x7f   : > { %2114 = vmatprep.mubr.msk.bf16.mxu0 %vm362_vm0, %v317_v28 }
  0x86   : > { %2115 = vmatmul.mubr.msk.bf16.gmra.mrb[52].mxu0 %vm362_vm0, %v318_v33 }
  0x87   : > { %2118 = vmatprep.mubr.msk.bf16.mxu0 %vm362_vm0, %v319_v34 }
  0x8e   : > { %2119 = vmatmul.mubr.msk.bf16.gmra.mrb[56].mxu0 %vm362_vm0, %v320_v39 }
  0x8f   : > { %2122 = vmatprep.mubr.msk.bf16.mxu0 %vm362_vm0, %v321_v40 }
  0x96   : > { %2123 = vmatmul.mubr.msk.bf16.gmra.mrb[60].mxu0 %vm362_vm0, %v322_v43 }
  0xf1   : > { %v2064_v45 = vpop.f32.mrb[0].mxu0 }
  0xf2   : > { %v502_v46 = vadd.f32 %v2064_v45, %v2561_v44  ;;  %v493_v47 = vpop.f32.mrb[1].mxu0 }
  0xf3   : > { %v494_v48 = vadd.f32 %v2561_v44, %v493_v47  ;;  %v2065_v49 = vpop.f32.mrb[2].mxu0 }
  0xf4   : > { %v505_v50 = vadd.f32 %v2065_v49, %v2561_v44  ;;  %v496_v51 = vpop.f32.mrb[3].mxu0  ;;  %v750_v53 = vmax.f32 %v502_v46, 0.0 }
  0xf5   : > { %v497_v52 = vadd.f32 %v2561_v44, %v496_v51  ;;  %v748_v55 = vmax.f32 %v494_v48, 0.0 }
  0xf6   : > { %v751_v54 = vmax.f32 %v505_v50, 0.0 }
  0xf7   : > { %v749_v56 = vmax.f32 %v497_v52, 0.0 }
  0xf8   : > { %v813_v57 = vpack.c.bf16 %v751_v54, %v750_v53 }
  0xf9   : > { %v812_v58 = vpack.c.bf16 %v749_v56, %v748_v55  ;;  %v2068_v59 = vpop.f32.mrb[4].mxu0 }
  0xfa   : > { %v518_v60 = vadd.f32 %v2068_v59, %v2561_v44  ;;  %v509_v61 = vpop.f32.mrb[5].mxu0 }
  0xfb   : > { %v510_v62 = vadd.f32 %v2561_v44, %v509_v61  ;;  %v2069_v63 = vpop.f32.mrb[6].mxu0  ;;  %2142 = vmatprep.mubr.bf16.mxu0 %v812_v58 }
  0xfc   : > { %v521_v0 = vadd.f32 %v2069_v63, %v2561_v44  ;;  %v512_v1 = vpop.f32.mrb[7].mxu0  ;;  %2143 = vmatmul.mubr.bf16.vlgmr.msra.gmra.mrb[64].mxu0 %v813_v57  ;;  %v754_v3 = vmax.f32 %v518_v60, 0.0 }
  0xfd   : > { %v513_v2 = vadd.f32 %v2561_v44, %v512_v1  ;;  %v752_v5 = vmax.f32 %v510_v62, 0.0 }
  0xfe   : > { %v755_v4 = vmax.f32 %v521_v0, 0.0 }
  0xff   : > { %v753_v6 = vmax.f32 %v513_v2, 0.0 }
 0x100   : > { %v815_v7 = vpack.c.bf16 %v755_v4, %v754_v3 }
 0x101   : > { %v2072_v8 = vpop.f32.mrb[8].mxu0  ;;  %v814_v9 = vpack.c.bf16 %v753_v6, %v752_v5 }
 0x102   : > { %v534_v10 = vadd.f32 %v2072_v8, %v2561_v44  ;;  %v525_v11 = vpop.f32.mrb[9].mxu0 }
 0x103   : > { %v526_v12 = vadd.f32 %v2561_v44, %v525_v11  ;;  %v2073_v13 = vpop.f32.mrb[10].mxu0  ;;  %2146 = vmatprep.mubr.bf16.mxu1 %v814_v9 }
 0x104   : > { %v537_v14 = vadd.f32 %v2073_v13, %v2561_v44  ;;  %v528_v15 = vpop.f32.mrb[11].mxu0  ;;  %2147 = vmatmul.mubr.bf16.vlgmr.msra.gmra.mrb[0].mxu1 %v815_v7  ;;  %v758_v17 = vmax.f32 %v534_v10, 0.0 }
 0x105   : > { %v529_v16 = vadd.f32 %v2561_v44, %v528_v15  ;;  %v756_v19 = vmax.f32 %v526_v12, 0.0 }
 0x106   : > { %v759_v18 = vmax.f32 %v537_v14, 0.0 }
 0x107   : > { %v757_v20 = vmax.f32 %v529_v16, 0.0 }
 0x108   : > { %v817_v21 = vpack.c.bf16 %v759_v18, %v758_v17 }
 0x109   : > { %v816_v22 = vpack.c.bf16 %v757_v20, %v756_v19  ;;  %v2076_v23 = vpop.f32.mrb[12].mxu0 }
 0x10a   : > { %v550_v24 = vadd.f32 %v2076_v23, %v2561_v44  ;;  %v541_v25 = vpop.f32.mrb[13].mxu0 }
 0x10b   : > { %v542_v26 = vadd.f32 %v2561_v44, %v541_v25  ;;  %v2077_v27 = vpop.f32.mrb[14].mxu0  ;;  %2150 = vmatprep.mubr.bf16.mxu1 %v816_v22 }
 0x10c   : > { %v553_v28 = vadd.f32 %v2077_v27, %v2561_v44  ;;  %v544_v29 = vpop.f32.mrb[15].mxu0  ;;  %2151 = vmatmul.mubr.bf16.gmra.mrb[4].mxu1 %v817_v21  ;;  %v762_v31 = vmax.f32 %v550_v24, 0.0 }
 0x10d   : > { %v545_v30 = vadd.f32 %v2561_v44, %v544_v29  ;;  %v760_v33 = vmax.f32 %v542_v26, 0.0 }
 0x10e   : > { %v763_v32 = vmax.f32 %v553_v28, 0.0 }
 0x10f   : > { %v761_v34 = vmax.f32 %v545_v30, 0.0 }
 0x110   : > { %v819_v35 = vpack.c.bf16 %v763_v32, %v762_v31 }
 0x111   : > { %v818_v36 = vpack.c.bf16 %v761_v34, %v760_v33  ;;  %v2080_v37 = vpop.f32.mrb[16].mxu0 }
 0x112   : > { %v566_v38 = vadd.f32 %v2080_v37, %v2561_v44  ;;  %v557_v39 = vpop.f32.mrb[17].mxu0 }
 0x113   : > { %v558_v40 = vadd.f32 %v2561_v44, %v557_v39  ;;  %v2081_v41 = vpop.f32.mrb[18].mxu0  ;;  %2154 = vmatprep.mubr.bf16.mxu1 %v818_v36 }
 0x114   : > { %v569_v42 = vadd.f32 %v2081_v41, %v2561_v44  ;;  %v560_v43 = vpop.f32.mrb[19].mxu0  ;;  %2155 = vmatmul.mubr.bf16.gmra.mrb[8].mxu1 %v819_v35  ;;  %v766_v46 = vmax.f32 %v566_v38, 0.0 }
 0x115   : > { %v561_v45 = vadd.f32 %v2561_v44, %v560_v43  ;;  %v764_v48 = vmax.f32 %v558_v40, 0.0 }
 0x116   : > { %v767_v47 = vmax.f32 %v569_v42, 0.0 }
 0x117   : > { %v765_v49 = vmax.f32 %v561_v45, 0.0 }
 0x118   : > { %v821_v50 = vpack.c.bf16 %v767_v47, %v766_v46 }
 0x119   : > { %v820_v51 = vpack.c.bf16 %v765_v49, %v764_v48  ;;  %v2084_v52 = vpop.f32.mrb[20].mxu0 }
 0x11a   : > { %v582_v53 = vadd.f32 %v2084_v52, %v2561_v44  ;;  %v573_v54 = vpop.f32.mrb[21].mxu0 }
 0x11b   : > { %v574_v55 = vadd.f32 %v2561_v44, %v573_v54  ;;  %v2085_v56 = vpop.f32.mrb[22].mxu0  ;;  %2158 = vmatprep.mubr.bf16.mxu1 %v820_v51 }
 0x11c   : > { %v585_v57 = vadd.f32 %v2085_v56, %v2561_v44  ;;  %v576_v58 = vpop.f32.mrb[23].mxu0  ;;  %2159 = vmatmul.mubr.bf16.gmra.mrb[12].mxu1 %v821_v50  ;;  %v770_v60 = vmax.f32 %v582_v53, 0.0 }
 0x11d   : > { %v577_v59 = vadd.f32 %v2561_v44, %v576_v58  ;;  %v768_v62 = vmax.f32 %v574_v55, 0.0 }
 0x11e   : > { %v771_v61 = vmax.f32 %v585_v57, 0.0 }
 0x11f   : > { %v769_v63 = vmax.f32 %v577_v59, 0.0 }
 0x120   : > { %v823_v0 = vpack.c.bf16 %v771_v61, %v770_v60 }
 0x121   : > { %v822_v1 = vpack.c.bf16 %v769_v63, %v768_v62  ;;  %v2088_v2 = vpop.f32.mrb[24].mxu0 }
 0x122   : > { %v598_v3 = vadd.f32 %v2088_v2, %v2561_v44  ;;  %v589_v4 = vpop.f32.mrb[25].mxu0 }
 0x123   : > { %v590_v5 = vadd.f32 %v2561_v44, %v589_v4  ;;  %v2089_v6 = vpop.f32.mrb[26].mxu0  ;;  %2162 = vmatprep.mubr.bf16.mxu1 %v822_v1 }
 0x124   : > { %v601_v7 = vadd.f32 %v2089_v6, %v2561_v44  ;;  %v592_v8 = vpop.f32.mrb[27].mxu0  ;;  %2163 = vmatmul.mubr.bf16.gmra.mrb[16].mxu1 %v823_v0  ;;  %v774_v10 = vmax.f32 %v598_v3, 0.0 }
 0x125   : > { %v593_v9 = vadd.f32 %v2561_v44, %v592_v8  ;;  %v772_v12 = vmax.f32 %v590_v5, 0.0 }
 0x126   : > { %v775_v11 = vmax.f32 %v601_v7, 0.0 }
 0x127   : > { %v773_v13 = vmax.f32 %v593_v9, 0.0 }
 0x128   : > { %v825_v14 = vpack.c.bf16 %v775_v11, %v774_v10 }
 0x129   : > { %v824_v15 = vpack.c.bf16 %v773_v13, %v772_v12  ;;  %v2092_v16 = vpop.f32.mrb[28].mxu0 }
 0x12a   : > { %v614_v17 = vadd.f32 %v2092_v16, %v2561_v44  ;;  %v605_v18 = vpop.f32.mrb[29].mxu0 }
 0x12b   : > { %v606_v19 = vadd.f32 %v2561_v44, %v605_v18  ;;  %v2093_v20 = vpop.f32.mrb[30].mxu0  ;;  %2166 = vmatprep.mubr.bf16.mxu1 %v824_v15 }
 0x12c   : > { %v617_v21 = vadd.f32 %v2093_v20, %v2561_v44  ;;  %v608_v22 = vpop.f32.mrb[31].mxu0  ;;  %2167 = vmatmul.mubr.bf16.gmra.mrb[20].mxu1 %v825_v14  ;;  %v778_v24 = vmax.f32 %v614_v17, 0.0 }
 0x12d   : > { %v609_v23 = vadd.f32 %v2561_v44, %v608_v22  ;;  %v776_v26 = vmax.f32 %v606_v19, 0.0 }
 0x12e   : > { %v779_v25 = vmax.f32 %v617_v21, 0.0 }
 0x12f   : > { %v777_v27 = vmax.f32 %v609_v23, 0.0 }
 0x130   : > { %v827_v28 = vpack.c.bf16 %v779_v25, %v778_v24 }
 0x131   : > { %v826_v29 = vpack.c.bf16 %v777_v27, %v776_v26  ;;  %v2096_v30 = vpop.f32.mrb[32].mxu0 }
 0x132   : > { %v630_v31 = vadd.f32 %v2096_v30, %v2561_v44  ;;  %v621_v32 = vpop.f32.mrb[33].mxu0 }
 0x133   : > { %v622_v33 = vadd.f32 %v2561_v44, %v621_v32  ;;  %v2097_v34 = vpop.f32.mrb[34].mxu0  ;;  %2170 = vmatprep.mubr.bf16.mxu1 %v826_v29 }
 0x134   : > { %v633_v35 = vadd.f32 %v2097_v34, %v2561_v44  ;;  %v624_v36 = vpop.f32.mrb[35].mxu0  ;;  %2171 = vmatmul.mubr.bf16.gmra.mrb[24].mxu1 %v827_v28  ;;  %v782_v38 = vmax.f32 %v630_v31, 0.0 }
 0x135   : > { %v625_v37 = vadd.f32 %v2561_v44, %v624_v36  ;;  %v780_v40 = vmax.f32 %v622_v33, 0.0 }
 0x136   : > { %v783_v39 = vmax.f32 %v633_v35, 0.0 }
 0x137   : > { %v781_v41 = vmax.f32 %v625_v37, 0.0 }
 0x138   : > { %v829_v42 = vpack.c.bf16 %v783_v39, %v782_v38 }
 0x139   : > { %v828_v43 = vpack.c.bf16 %v781_v41, %v780_v40  ;;  %v2100_v45 = vpop.f32.mrb[36].mxu0 }
 0x13a   : > { %v646_v46 = vadd.f32 %v2100_v45, %v2561_v44  ;;  %v637_v47 = vpop.f32.mrb[37].mxu0 }
 0x13b   : > { %v638_v48 = vadd.f32 %v2561_v44, %v637_v47  ;;  %v2101_v49 = vpop.f32.mrb[38].mxu0  ;;  %2174 = vmatprep.mubr.bf16.mxu1 %v828_v43 }
 0x13c   : > { %v649_v50 = vadd.f32 %v2101_v49, %v2561_v44  ;;  %v640_v51 = vpop.f32.mrb[39].mxu0  ;;  %2175 = vmatmul.mubr.bf16.gmra.mrb[28].mxu1 %v829_v42  ;;  %v786_v53 = vmax.f32 %v646_v46, 0.0 }
 0x13d   : > { %v641_v52 = vadd.f32 %v2561_v44, %v640_v51  ;;  %v784_v55 = vmax.f32 %v638_v48, 0.0 }
 0x13e   : > { %v787_v54 = vmax.f32 %v649_v50, 0.0 }
 0x13f   : > { %v785_v56 = vmax.f32 %v641_v52, 0.0 }
 0x140   : > { %v831_v57 = vpack.c.bf16 %v787_v54, %v786_v53 }
 0x141   : > { %v830_v58 = vpack.c.bf16 %v785_v56, %v784_v55  ;;  %v2104_v59 = vpop.f32.mrb[40].mxu0 }
 0x142   : > { %v662_v60 = vadd.f32 %v2104_v59, %v2561_v44  ;;  %v653_v61 = vpop.f32.mrb[41].mxu0 }
 0x143   : > { %v654_v62 = vadd.f32 %v2561_v44, %v653_v61  ;;  %v2105_v63 = vpop.f32.mrb[42].mxu0  ;;  %2178 = vmatprep.mubr.bf16.mxu1 %v830_v58 }
 0x144   : > { %v665_v0 = vadd.f32 %v2105_v63, %v2561_v44  ;;  %v656_v1 = vpop.f32.mrb[43].mxu0  ;;  %2179 = vmatmul.mubr.bf16.gmra.mrb[32].mxu1 %v831_v57  ;;  %v790_v3 = vmax.f32 %v662_v60, 0.0 }
 0x145   : > { %v657_v2 = vadd.f32 %v2561_v44, %v656_v1  ;;  %v788_v5 = vmax.f32 %v654_v62, 0.0 }
 0x146   : > { %v791_v4 = vmax.f32 %v665_v0, 0.0 }
 0x147   : > { %v789_v6 = vmax.f32 %v657_v2, 0.0 }
 0x148   : > { %v833_v7 = vpack.c.bf16 %v791_v4, %v790_v3 }
 0x149   : > { %v832_v8 = vpack.c.bf16 %v789_v6, %v788_v5  ;;  %v2108_v9 = vpop.f32.mrb[44].mxu0 }
 0x14a   : > { %v678_v10 = vadd.f32 %v2108_v9, %v2561_v44  ;;  %v669_v11 = vpop.f32.mrb[45].mxu0 }
 0x14b   : > { %v670_v12 = vadd.f32 %v2561_v44, %v669_v11  ;;  %v2109_v13 = vpop.f32.mrb[46].mxu0  ;;  %2182 = vmatprep.mubr.bf16.mxu1 %v832_v8 }
 0x14c   : > { %v681_v14 = vadd.f32 %v2109_v13, %v2561_v44  ;;  %v672_v15 = vpop.f32.mrb[47].mxu0  ;;  %2183 = vmatmul.mubr.bf16.gmra.mrb[36].mxu1 %v833_v7  ;;  %v794_v17 = vmax.f32 %v678_v10, 0.0 }
 0x14d   : > { %v673_v16 = vadd.f32 %v2561_v44, %v672_v15  ;;  %v792_v19 = vmax.f32 %v670_v12, 0.0 }
 0x14e   : > { %v795_v18 = vmax.f32 %v681_v14, 0.0 }
 0x14f   : > { %v793_v20 = vmax.f32 %v673_v16, 0.0 }
 0x150   : > { %v835_v21 = vpack.c.bf16 %v795_v18, %v794_v17  ;;  %v2631_v17 = vld [vmem:[%s2789_s4] ss:$0 sm:$0xff] }
 0x151   : > { %v834_v22 = vpack.c.bf16 %v793_v20, %v792_v19  ;;  %v2112_v23 = vpop.f32.mrb[48].mxu0 }
 0x152   : > { %v694_v24 = vadd.f32 %v2112_v23, %v2561_v44  ;;  %v685_v25 = vpop.f32.mrb[49].mxu0 }
 0x153   : > { %v686_v26 = vadd.f32 %v2561_v44, %v685_v25  ;;  %v2113_v27 = vpop.f32.mrb[50].mxu0  ;;  %2186 = vmatprep.mubr.bf16.mxu1 %v834_v22 }
 0x154   : > { %v697_v28 = vadd.f32 %v2113_v27, %v2561_v44  ;;  %v688_v29 = vpop.f32.mrb[51].mxu0  ;;  %2187 = vmatmul.mubr.bf16.gmra.mrb[40].mxu1 %v835_v21  ;;  %v798_v31 = vmax.f32 %v694_v24, 0.0 }
 0x155   : > { %v689_v30 = vadd.f32 %v2561_v44, %v688_v29  ;;  %v796_v33 = vmax.f32 %v686_v26, 0.0 }
 0x156   : > { %v799_v32 = vmax.f32 %v697_v28, 0.0 }
 0x157   : > { %v797_v34 = vmax.f32 %v689_v30, 0.0 }
 0x158   : > { %v837_v35 = vpack.c.bf16 %v799_v32, %v798_v31 }
 0x159   : > { %v836_v36 = vpack.c.bf16 %v797_v34, %v796_v33  ;;  %v2116_v37 = vpop.f32.mrb[52].mxu0 }
 0x15a   : > { %v710_v38 = vadd.f32 %v2116_v37, %v2561_v44  ;;  %v701_v39 = vpop.f32.mrb[53].mxu0 }
 0x15b   : > { %v702_v40 = vadd.f32 %v2561_v44, %v701_v39  ;;  %v2117_v41 = vpop.f32.mrb[54].mxu0  ;;  %2190 = vmatprep.mubr.bf16.mxu1 %v836_v36 }
 0x15c   : > { %v713_v42 = vadd.f32 %v2117_v41, %v2561_v44  ;;  %v704_v43 = vpop.f32.mrb[55].mxu0  ;;  %2191 = vmatmul.mubr.bf16.gmra.mrb[44].mxu1 %v837_v35  ;;  %v802_v46 = vmax.f32 %v710_v38, 0.0 }
 0x15d   : > { %v705_v45 = vadd.f32 %v2561_v44, %v704_v43  ;;  %v800_v48 = vmax.f32 %v702_v40, 0.0 }
 0x15e   : > { %v803_v47 = vmax.f32 %v713_v42, 0.0 }
 0x15f   : > { %v801_v49 = vmax.f32 %v705_v45, 0.0 }
 0x160   : > { %v839_v50 = vpack.c.bf16 %v803_v47, %v802_v46 }
 0x161   : > { %v838_v51 = vpack.c.bf16 %v801_v49, %v800_v48  ;;  %v2120_v52 = vpop.f32.mrb[56].mxu0 }
 0x162   : > { %v726_v53 = vadd.f32 %v2120_v52, %v2561_v44  ;;  %v717_v54 = vpop.f32.mrb[57].mxu0 }
 0x163   : > { %v718_v55 = vadd.f32 %v2561_v44, %v717_v54  ;;  %v2121_v56 = vpop.f32.mrb[58].mxu0  ;;  %2194 = vmatprep.mubr.bf16.mxu1 %v838_v51 }
 0x164   : > { %v729_v57 = vadd.f32 %v2121_v56, %v2561_v44  ;;  %v720_v58 = vpop.f32.mrb[59].mxu0  ;;  %2195 = vmatmul.mubr.bf16.gmra.mrb[48].mxu1 %v839_v50  ;;  %v806_v60 = vmax.f32 %v726_v53, 0.0 }
 0x165   : > { %v721_v59 = vadd.f32 %v2561_v44, %v720_v58  ;;  %v804_v62 = vmax.f32 %v718_v55, 0.0 }
 0x166   : > { %v807_v61 = vmax.f32 %v729_v57, 0.0 }
 0x167   : > { %v805_v63 = vmax.f32 %v721_v59, 0.0 }
 0x168   : > { %v841_v0 = vpack.c.bf16 %v807_v61, %v806_v60 }
 0x169   : > { %v840_v1 = vpack.c.bf16 %v805_v63, %v804_v62  ;;  %v2124_v2 = vpop.f32.mrb[60].mxu0 }
 0x16a   : > { %v742_v3 = vadd.f32 %v2124_v2, %v2561_v44  ;;  %v733_v4 = vpop.f32.mrb[61].mxu0 }
 0x16b   : > { %v734_v5 = vadd.f32 %v2561_v44, %v733_v4  ;;  %v2125_v6 = vpop.f32.mrb[62].mxu0  ;;  %2198 = vmatprep.mubr.bf16.mxu1 %v840_v1 }
 0x16c   : > { %v745_v7 = vadd.f32 %v2125_v6, %v2561_v44  ;;  %v736_v8 = vpop.f32.mrb[63].mxu0  ;;  %2199 = vmatmul.mubr.bf16.gmra.mrb[52].mxu1 %v841_v0  ;;  %v810_v10 = vmax.f32 %v742_v3, 0.0 }
 0x16d   : > { %v737_v9 = vadd.f32 %v2561_v44, %v736_v8  ;;  %v808_v12 = vmax.f32 %v734_v5, 0.0 }
 0x16e   : > { %v811_v11 = vmax.f32 %v745_v7, 0.0 }
 0x16f   : > { %v809_v13 = vmax.f32 %v737_v9, 0.0 }
 0x170   : > { %v843_v14 = vpack.c.bf16 %v811_v11, %v810_v10 }
 0x171   : > { %v842_v15 = vpack.c.bf16 %v809_v13, %v808_v12 }
 0x173   : > { %2202 = vmatprep.mubr.bf16.mxu1 %v842_v15 }
 0x174   : > { %2203 = vmatmul.mubr.bf16.gmra.mrb[56].mxu1 %v843_v14 }
 0x1cf   : > { %v2144_v16 = vpop.f32.mrb[64].mxu0 }
 0x1d0   : > { %v949_v18 = vpop.f32.mrb[65].mxu0  ;;  %v958_v44 = vadd.f32 %v2144_v16, %v2631_v17 }
 0x1d1   : > { %v2145_v19 = vpop.f32.mrb[66].mxu0  ;;  %v950_v22 = vadd.f32 %v2631_v17, %v949_v18 }
 0x1d2   : > { %v961_v20 = vadd.f32 %v2145_v19, %v2631_v17  ;;  %v952_v21 = vpop.f32.mrb[67].mxu0 }
 0x1d3   : > { %v953_v23 = vadd.f32 %v2631_v17, %v952_v21 }
 0x1d4   : > { %v1795_v24 = vpack.c.bf16 %v961_v20, %v958_v44 }
 0x1d5   : > { %v1790_v25 = vpack.c.bf16 %v953_v23, %v950_v22 }
 0x1d6   : > { %1947 = vst [vmem:[%s2639_s8 + $0x8] sm:$0xff] %v1795_v24  }
 0x1d7   : > { %1791 = vst [vmem:[%s2639_s8] sm:$0xff] %v1790_v25   ;;  %v2148_v26 = vpop.f32.mrb[0].mxu1 }
 0x1d8   : > { %v965_v27 = vpop.f32.mrb[1].mxu1  ;;  %v974_v29 = vadd.f32 %v2148_v26, %v2631_v17 }
 0x1d9   : > { %v2149_v28 = vpop.f32.mrb[2].mxu1  ;;  %v966_v32 = vadd.f32 %v2631_v17, %v965_v27 }
 0x1da   : > { %v977_v30 = vadd.f32 %v2149_v28, %v2631_v17  ;;  %v968_v31 = vpop.f32.mrb[3].mxu1 }
 0x1db   : > { %v969_v33 = vadd.f32 %v2631_v17, %v968_v31 }
 0x1dc   : > { %v1805_v34 = vpack.c.bf16 %v977_v30, %v974_v29 }
 0x1dd   : > { %v1800_v35 = vpack.c.bf16 %v969_v33, %v966_v32 }
 0x1de   : > { %1949 = vst [vmem:[%s2639_s8 + $0x18] sm:$0xff] %v1805_v34  }
 0x1df   : > { %1948 = vst [vmem:[%s2639_s8 + $0x10] sm:$0xff] %v1800_v35   ;;  %v2152_v36 = vpop.f32.mrb[4].mxu1 }
 0x1e0   : > { %v981_v37 = vpop.f32.mrb[5].mxu1  ;;  %v990_v39 = vadd.f32 %v2152_v36, %v2631_v17 }
 0x1e1   : > { %v2153_v38 = vpop.f32.mrb[6].mxu1  ;;  %v982_v42 = vadd.f32 %v2631_v17, %v981_v37 }
 0x1e2   : > { %v993_v40 = vadd.f32 %v2153_v38, %v2631_v17  ;;  %v984_v41 = vpop.f32.mrb[7].mxu1 }
 0x1e3   : > { %v985_v43 = vadd.f32 %v2631_v17, %v984_v41 }
 0x1e4   : > { %v1815_v45 = vpack.c.bf16 %v993_v40, %v990_v39 }
 0x1e5   : > { %v1810_v46 = vpack.c.bf16 %v985_v43, %v982_v42 }
 0x1e6   : > { %1951 = vst [vmem:[%s2639_s8 + $0x28] sm:$0xff] %v1815_v45  }
 0x1e7   : > { %1950 = vst [vmem:[%s2639_s8 + $0x20] sm:$0xff] %v1810_v46   ;;  %v2156_v47 = vpop.f32.mrb[8].mxu1 }
 0x1e8   : > { %v997_v48 = vpop.f32.mrb[9].mxu1  ;;  %v1006_v50 = vadd.f32 %v2156_v47, %v2631_v17 }
 0x1e9   : > { %v2157_v49 = vpop.f32.mrb[10].mxu1  ;;  %v998_v53 = vadd.f32 %v2631_v17, %v997_v48 }
 0x1ea   : > { %v1009_v51 = vadd.f32 %v2157_v49, %v2631_v17  ;;  %v1000_v52 = vpop.f32.mrb[11].mxu1 }
 0x1eb   : > { %v1001_v54 = vadd.f32 %v2631_v17, %v1000_v52 }
 0x1ec   : > { %v1825_v55 = vpack.c.bf16 %v1009_v51, %v1006_v50 }
 0x1ed   : > { %v1820_v56 = vpack.c.bf16 %v1001_v54, %v998_v53 }
 0x1ee   : > { %1953 = vst [vmem:[%s2639_s8 + $0x38] sm:$0xff] %v1825_v55  }
 0x1ef   : > { %1952 = vst [vmem:[%s2639_s8 + $0x30] sm:$0xff] %v1820_v56   ;;  %v2160_v57 = vpop.f32.mrb[12].mxu1 }
 0x1f0   : > { %v1013_v58 = vpop.f32.mrb[13].mxu1  ;;  %v1022_v60 = vadd.f32 %v2160_v57, %v2631_v17 }
 0x1f1   : > { %v2161_v59 = vpop.f32.mrb[14].mxu1  ;;  %v1014_v63 = vadd.f32 %v2631_v17, %v1013_v58 }
 0x1f2   : > { %v1025_v61 = vadd.f32 %v2161_v59, %v2631_v17  ;;  %v1016_v62 = vpop.f32.mrb[15].mxu1 }
 0x1f3   : > { %v1017_v0 = vadd.f32 %v2631_v17, %v1016_v62 }
 0x1f4   : > { %v1835_v1 = vpack.c.bf16 %v1025_v61, %v1022_v60 }
 0x1f5   : > { %v1830_v2 = vpack.c.bf16 %v1017_v0, %v1014_v63 }
 0x1f6   : > { %1955 = vst [vmem:[%s2639_s8 + $0x48] sm:$0xff] %v1835_v1  }
 0x1f7   : > { %1954 = vst [vmem:[%s2639_s8 + $0x40] sm:$0xff] %v1830_v2   ;;  %v2164_v3 = vpop.f32.mrb[16].mxu1 }
 0x1f8   : > { %v1029_v4 = vpop.f32.mrb[17].mxu1  ;;  %v1038_v6 = vadd.f32 %v2164_v3, %v2631_v17 }
 0x1f9   : > { %v2165_v5 = vpop.f32.mrb[18].mxu1  ;;  %v1030_v9 = vadd.f32 %v2631_v17, %v1029_v4 }
 0x1fa   : > { %v1041_v7 = vadd.f32 %v2165_v5, %v2631_v17  ;;  %v1032_v8 = vpop.f32.mrb[19].mxu1 }
 0x1fb   : > { %v1033_v10 = vadd.f32 %v2631_v17, %v1032_v8 }
 0x1fc   : > { %v1845_v11 = vpack.c.bf16 %v1041_v7, %v1038_v6 }
 0x1fd   : > { %v1840_v12 = vpack.c.bf16 %v1033_v10, %v1030_v9 }
 0x1fe   : > { %1957 = vst [vmem:[%s2639_s8 + $0x58] sm:$0xff] %v1845_v11  }
 0x1ff   : > { %1956 = vst [vmem:[%s2639_s8 + $0x50] sm:$0xff] %v1840_v12   ;;  %v2168_v13 = vpop.f32.mrb[20].mxu1 }
 0x200   : > { %v1045_v14 = vpop.f32.mrb[21].mxu1  ;;  %v1054_v16 = vadd.f32 %v2168_v13, %v2631_v17 }
 0x201   : > { %v2169_v15 = vpop.f32.mrb[22].mxu1  ;;  %v1046_v44 = vadd.f32 %v2631_v17, %v1045_v14 }
 0x202   : > { %v1057_v18 = vadd.f32 %v2169_v15, %v2631_v17  ;;  %v1048_v19 = vpop.f32.mrb[23].mxu1 }
 0x203   : > { %v1049_v20 = vadd.f32 %v2631_v17, %v1048_v19 }
 0x204   : > { %v1855_v21 = vpack.c.bf16 %v1057_v18, %v1054_v16 }
 0x205   : > { %v1850_v22 = vpack.c.bf16 %v1049_v20, %v1046_v44 }
 0x206   : > { %1959 = vst [vmem:[%s2639_s8 + $0x68] sm:$0xff] %v1855_v21  }
 0x207   : > { %1958 = vst [vmem:[%s2639_s8 + $0x60] sm:$0xff] %v1850_v22   ;;  %v2172_v23 = vpop.f32.mrb[24].mxu1 }
 0x208   : > { %v1061_v24 = vpop.f32.mrb[25].mxu1  ;;  %v1070_v26 = vadd.f32 %v2172_v23, %v2631_v17 }
 0x209   : > { %v2173_v25 = vpop.f32.mrb[26].mxu1  ;;  %v1062_v29 = vadd.f32 %v2631_v17, %v1061_v24 }
 0x20a   : > { %v1073_v27 = vadd.f32 %v2173_v25, %v2631_v17  ;;  %v1064_v28 = vpop.f32.mrb[27].mxu1 }
 0x20b   : > { %v1065_v30 = vadd.f32 %v2631_v17, %v1064_v28 }
 0x20c   : > { %v1865_v31 = vpack.c.bf16 %v1073_v27, %v1070_v26 }
 0x20d   : > { %v1860_v32 = vpack.c.bf16 %v1065_v30, %v1062_v29 }
 0x20e   : > { %1961 = vst [vmem:[%s2639_s8 + $0x78] sm:$0xff] %v1865_v31  }
 0x20f   : > { %1960 = vst [vmem:[%s2639_s8 + $0x70] sm:$0xff] %v1860_v32   ;;  %v2176_v33 = vpop.f32.mrb[28].mxu1 }
 0x210   : > { %v1077_v34 = vpop.f32.mrb[29].mxu1  ;;  %v1086_v36 = vadd.f32 %v2176_v33, %v2631_v17 }
 0x211   : > { %v2177_v35 = vpop.f32.mrb[30].mxu1  ;;  %v1078_v39 = vadd.f32 %v2631_v17, %v1077_v34 }
 0x212   : > { %v1089_v37 = vadd.f32 %v2177_v35, %v2631_v17  ;;  %v1080_v38 = vpop.f32.mrb[31].mxu1 }
 0x213   : > { %v1081_v40 = vadd.f32 %v2631_v17, %v1080_v38 }
 0x214   : > { %v1875_v41 = vpack.c.bf16 %v1089_v37, %v1086_v36 }
 0x215   : > { %v1870_v42 = vpack.c.bf16 %v1081_v40, %v1078_v39 }
 0x216   : > { %1963 = vst [vmem:[%s2639_s8 + $0x88] sm:$0xff] %v1875_v41  }
 0x217   : > { %1962 = vst [vmem:[%s2639_s8 + $0x80] sm:$0xff] %v1870_v42   ;;  %v2180_v43 = vpop.f32.mrb[32].mxu1 }
 0x218   : > { %v1093_v45 = vpop.f32.mrb[33].mxu1  ;;  %v1102_v47 = vadd.f32 %v2180_v43, %v2631_v17 }
 0x219   : > { %v2181_v46 = vpop.f32.mrb[34].mxu1  ;;  %v1094_v50 = vadd.f32 %v2631_v17, %v1093_v45 }
 0x21a   : > { %v1105_v48 = vadd.f32 %v2181_v46, %v2631_v17  ;;  %v1096_v49 = vpop.f32.mrb[35].mxu1 }
 0x21b   : > { %v1097_v51 = vadd.f32 %v2631_v17, %v1096_v49 }
 0x21c   : > { %v1885_v52 = vpack.c.bf16 %v1105_v48, %v1102_v47 }
 0x21d   : > { %v1880_v53 = vpack.c.bf16 %v1097_v51, %v1094_v50 }
 0x21e   : > { %1965 = vst [vmem:[%s2639_s8 + $0x98] sm:$0xff] %v1885_v52  }
 0x21f   : > { %1964 = vst [vmem:[%s2639_s8 + $0x90] sm:$0xff] %v1880_v53   ;;  %v2184_v54 = vpop.f32.mrb[36].mxu1 }
 0x220   : > { %v1109_v55 = vpop.f32.mrb[37].mxu1  ;;  %v1118_v57 = vadd.f32 %v2184_v54, %v2631_v17 }
 0x221   : > { %v2185_v56 = vpop.f32.mrb[38].mxu1  ;;  %v1110_v60 = vadd.f32 %v2631_v17, %v1109_v55 }
 0x222   : > { %v1121_v58 = vadd.f32 %v2185_v56, %v2631_v17  ;;  %v1112_v59 = vpop.f32.mrb[39].mxu1 }
 0x223   : > { %v1113_v61 = vadd.f32 %v2631_v17, %v1112_v59 }
 0x224   : > { %v1895_v62 = vpack.c.bf16 %v1121_v58, %v1118_v57 }
 0x225   : > { %v1890_v63 = vpack.c.bf16 %v1113_v61, %v1110_v60 }
 0x226   : > { %1967 = vst [vmem:[%s2639_s8 + $0xa8] sm:$0xff] %v1895_v62  }
 0x227   : > { %1966 = vst [vmem:[%s2639_s8 + $0xa0] sm:$0xff] %v1890_v63   ;;  %v2188_v0 = vpop.f32.mrb[40].mxu1 }
 0x228   : > { %v1125_v1 = vpop.f32.mrb[41].mxu1  ;;  %v1134_v3 = vadd.f32 %v2188_v0, %v2631_v17 }
 0x229   : > { %v2189_v2 = vpop.f32.mrb[42].mxu1  ;;  %v1126_v6 = vadd.f32 %v2631_v17, %v1125_v1 }
 0x22a   : > { %v1137_v4 = vadd.f32 %v2189_v2, %v2631_v17  ;;  %v1128_v5 = vpop.f32.mrb[43].mxu1 }
 0x22b   : > { %v1129_v7 = vadd.f32 %v2631_v17, %v1128_v5 }
 0x22c   : > { %v1905_v8 = vpack.c.bf16 %v1137_v4, %v1134_v3 }
 0x22d   : > { %v1900_v9 = vpack.c.bf16 %v1129_v7, %v1126_v6 }
 0x22e   : > { %1969 = vst [vmem:[%s2639_s8 + $0xb8] sm:$0xff] %v1905_v8  }
 0x22f   : > { %1968 = vst [vmem:[%s2639_s8 + $0xb0] sm:$0xff] %v1900_v9   ;;  %v2192_v10 = vpop.f32.mrb[44].mxu1 }
 0x230   : > { %v1141_v11 = vpop.f32.mrb[45].mxu1  ;;  %v1150_v13 = vadd.f32 %v2192_v10, %v2631_v17 }
 0x231   : > { %v2193_v12 = vpop.f32.mrb[46].mxu1  ;;  %v1142_v16 = vadd.f32 %v2631_v17, %v1141_v11 }
 0x232   : > { %v1153_v14 = vadd.f32 %v2193_v12, %v2631_v17  ;;  %v1144_v15 = vpop.f32.mrb[47].mxu1 }
 0x233   : > { %v1145_v18 = vadd.f32 %v2631_v17, %v1144_v15 }
 0x234   : > { %v1915_v19 = vpack.c.bf16 %v1153_v14, %v1150_v13 }
 0x235   : > { %v1910_v44 = vpack.c.bf16 %v1145_v18, %v1142_v16 }
 0x236   : > { %1971 = vst [vmem:[%s2639_s8 + $0xc8] sm:$0xff] %v1915_v19  }
 0x237   : > { %1970 = vst [vmem:[%s2639_s8 + $0xc0] sm:$0xff] %v1910_v44   ;;  %v2196_v20 = vpop.f32.mrb[48].mxu1 }
 0x238   : > { %v1157_v21 = vpop.f32.mrb[49].mxu1  ;;  %v1166_v23 = vadd.f32 %v2196_v20, %v2631_v17 }
 0x239   : > { %v2197_v22 = vpop.f32.mrb[50].mxu1  ;;  %v1158_v26 = vadd.f32 %v2631_v17, %v1157_v21 }
 0x23a   : > { %v1169_v24 = vadd.f32 %v2197_v22, %v2631_v17  ;;  %v1160_v25 = vpop.f32.mrb[51].mxu1 }
 0x23b   : > { %v1161_v27 = vadd.f32 %v2631_v17, %v1160_v25 }
 0x23c   : > { %v1925_v28 = vpack.c.bf16 %v1169_v24, %v1166_v23 }
 0x23d   : > { %v1920_v29 = vpack.c.bf16 %v1161_v27, %v1158_v26 }
 0x23e   : > { %1973 = vst [vmem:[%s2639_s8 + $0xd8] sm:$0xff] %v1925_v28  }
 0x23f   : > { %1972 = vst [vmem:[%s2639_s8 + $0xd0] sm:$0xff] %v1920_v29   ;;  %v2200_v30 = vpop.f32.mrb[52].mxu1 }
 0x240   : > { %v1173_v31 = vpop.f32.mrb[53].mxu1  ;;  %v1182_v33 = vadd.f32 %v2200_v30, %v2631_v17 }
 0x241   : > { %v2201_v32 = vpop.f32.mrb[54].mxu1  ;;  %v1174_v36 = vadd.f32 %v2631_v17, %v1173_v31 }
 0x242   : > { %v1185_v34 = vadd.f32 %v2201_v32, %v2631_v17  ;;  %v1176_v35 = vpop.f32.mrb[55].mxu1 }
 0x243   : > { %v1177_v37 = vadd.f32 %v2631_v17, %v1176_v35 }
 0x244   : > { %v1935_v38 = vpack.c.bf16 %v1185_v34, %v1182_v33 }
 0x245   : > { %v1930_v39 = vpack.c.bf16 %v1177_v37, %v1174_v36 }
 0x246   : > { %1975 = vst [vmem:[%s2639_s8 + $0xe8] sm:$0xff] %v1935_v38  }
 0x247   : > { %1974 = vst [vmem:[%s2639_s8 + $0xe0] sm:$0xff] %v1930_v39   ;;  %v2204_v40 = vpop.f32.mrb[56].mxu1 }
 0x248   : > { %v1189_v41 = vpop.f32.mrb[57].mxu1  ;;  %v1198_v43 = vadd.f32 %v2204_v40, %v2631_v17 }
 0x249   : > { %v2205_v42 = vpop.f32.mrb[58].mxu1  ;;  %v1190_v47 = vadd.f32 %v2631_v17, %v1189_v41 }
 0x24a   : > { %v1201_v45 = vadd.f32 %v2205_v42, %v2631_v17  ;;  %v1192_v46 = vpop.f32.mrb[59].mxu1 }
 0x24b   : > { %v1193_v48 = vadd.f32 %v2631_v17, %v1192_v46 }
 0x24c   : > { %v1945_v49 = vpack.c.bf16 %v1201_v45, %v1198_v43 }
 0x24d   : > { %v1940_v50 = vpack.c.bf16 %v1193_v48, %v1190_v47 }
 0x24e   : > { %1977 = vst [vmem:[%s2639_s8 + $0xf8] sm:$0xff] %v1945_v49  }
 0x24f   : > { %1976 = vst [vmem:[%s2639_s8 + $0xf0] sm:$0xff] %v1940_v50  }
 0x250   : > { %2288 = shalt.err (!%p2285_p3)
}
 0x251   : > { %s2289_s25 = scalar_lea.hbm %s2736_s13, 4096  ;;  %s2293_s30 = scalar_lea.hbm %s2790_s5, 8192 }
 0x252   : > { %p2290_p4 = scmp.ne.s32.totalorder %s2736_s13, %s2289_s25  ;;  %p2294_p9 = scmp.lt.u32.totalorder %s2736_s13, %s2790_s5 }
 0x253   : > { %p2295_p10 = scmp.lt.u32.totalorder %s2293_s30, %s2289_s25  ;;  %p2297_p12 = scmp.lt.u32.totalorder %s2289_s25, %s2736_s13 }
 0x254   : > { %p2291_p7 = pnand %p2290_p4, %p2410_p5 }
 0x255   : > { %p2296_p11 = por %p2295_p10, %p2294_p9 }
 0x256   : > { %p2292_p8 = pneg %p2291_p7 }
 0x257   : > { %p2298_p13 = por %p2297_p12, %p2296_p11 }
 0x259   : > { %p2299_p0 = pnand %p2298_p13, %p2292_p8 }
 0x25b   : > { %2302 = shalt.err (!%p2299_p0)
}
 0x25c   : > { %s2340_s8 = smov 64   ;;  %s2341_s9 = smov 4  }
 0x25d   : > { %2222 = dma.vmem_to_hbm [thread:$0]  (%p2410_p5), %s2738_s10, 4096, %s2736_s13, %s2744_s22, %s2340_s8, %s2340_s8, %s2341_s9  }
 0x25e PF: > { %p2228_p1 = scmp.ge.s32.totalorder %s2337_s21, 2  ;;  %s1553_s11 = sand.u32 1, %s2325_s18  }
 0x25f   : > { %s1554_s12 = scalar_lea.sflag [#allocation3], %s1553_s11 }
 0x260   : > { %p2225_p2 = pnand %p2228_p1, %p2414_p6 }
 0x262   : > { %2320 = dma.done.wait (!%p2225_p2), %s1554_s12, 4096  }
 0x263   : > { %2322 = vsyncadd (!%p2225_p2), %s1554_s12, 4294963200  ;;  %p15_p3 = scmp.ge.s32.totalorder %s2397_s24, 4   ;;  %s2793_s18 = smov %s2329_s19 }
 0x264   : > { %s2794_s19 = smov %s2333_s20  ;;  %s2795_s20 = smov %s2408_s27 }
 0x265   : > { %s2796_s21 = smov %s2397_s24  ;;  %17 = sbr.rel (!%p15_p3) target bundleno = 3 (0x3), region = 75 }
 0x26c   :  { %1559 = vsyncpa [#allocation3], 1 }
 0x26d   :  { %1561 = vsyncpa [#allocation3 + $0x1], 1 }

</bundles_post_ra>
